<compile_context>
chip_gen: v7x
topology: tpu7x:2x2x1
jax: 0.10.0
libtpu: 0.0.40
codegen_flags: <defaults>
</compile_context>

<pallas_src>
import functools

import jax
import jax.numpy as jnp
from jax.experimental import pallas as pl
from jax.experimental.pallas import tpu as pltpu

LANES = 128
_TARGET_BLOCK_BYTES = 2 * 1024 * 1024   # per input, per grid step
_CHUNK_BYTES = 128 * 1024               # inner accumulation chunk


@functools.lru_cache(maxsize=None)
def _num_tensorcores():
    """Best-effort TensorCore-per-chip count (2 on v7x, 1 on v5e/v6e)."""
    try:
        info = pltpu.get_tpu_info()
    except Exception:
        return 1
    for attr in ("num_cores", "core_count", "num_tensorcores",
                 "cores_per_chip", "num_cores_per_chip"):
        v = getattr(info, attr, None)
        if isinstance(v, int) and 1 <= v <= 4:
            return v
    # TODO(synk): hook up the real TensorCore count on v7x if TpuInfo exposes it
    # under another name; 1 is always correct, it just forgoes the 2x there.
    return 1


def _charbonnier_partial_kernel(x_ref, y_ref, o_ref, *, eps, rows_total,
                                tile_rows, chunk_rows, tiles_per_core,
                                mask_needed):
    c = pl.program_id(0)   # TensorCore ("parallel") axis
    i = pl.program_id(1)   # reduction ("arbitrary") axis

    # Output block (c, 0, 0) stays resident across the reduction axis: use it
    # directly as the per-core accumulator.
    @pl.when(i == 0)
    def _():
        o_ref[...] = jnp.zeros_like(o_ref)

    n_chunks = tile_rows // chunk_rows
    eps_f = jnp.float32(eps)

    # Logical (unclamped) tile index. The index_map may clamp the DMA'd block
    # for overflow tiles on the last core; those rows are fully masked below.
    logical_tile = c * tiles_per_core + i
    tile_row0 = logical_tile * tile_rows

    def _chunk_sum(row0_in_tile, masked):
        xd = x_ref[pl.ds(row0_in_tile, chunk_rows), :].astype(jnp.float32)
        yd = y_ref[pl.ds(row0_in_tile, chunk_rows), :].astype(jnp.float32)
        d = xd - yd
        err = jnp.sqrt(d * d + eps_f)
        if masked:
            ridx = jax.lax.broadcasted_iota(jnp.int32, (chunk_rows, LANES), 0)
            valid = (tile_row0 + row0_in_tile + ridx) < rows_total
            # Garbage rows of a padded edge block may be NaN/Inf; select drops them.
            err = jnp.where(valid, err, jnp.float32(0.0))
        # Fold the chunk into one vreg-shaped partial sum (pure VPU adds).
        return err.reshape(chunk_rows // 8, 8, LANES).sum(axis=0)

    def _accumulate(masked):
        if n_chunks == 1:
            part = _chunk_sum(0, masked)
        else:
            def body(k, acc):
                r0 = pl.multiple_of(k * chunk_rows, chunk_rows)
                return acc + _chunk_sum(r0, masked)
            part = jax.lax.fori_loop(0, n_chunks, body,
                                     jnp.zeros((8, LANES), jnp.float32))
        o_ref[...] += part.reshape((1, 8, LANES))

    if not mask_needed:
        # Tiling divides evenly: every tile is full, no mask anywhere.
        _accumulate(False)
    else:
        is_full = (tile_row0 + tile_rows) <= rows_total

        @pl.when(is_full)
        def _():
            _accumulate(False)          # hot path: no iota/compare/select

        @pl.when(jnp.logical_not(is_full))
        def _():
            _accumulate(True)           # boundary / overflow tiles only


def charbonnier_loss(x, y, eps=1e-06, num_cores=None):
    """Pallas implementation of CharbonnierLoss.forward. Inputs: any shape (e.g. NCHW)."""
    assert x.shape == y.shape, "x and y must have the same shape"
    n = x.size

    xf = x.reshape(-1)
    yf = y.reshape(-1)

    itemsize = max(jnp.dtype(x.dtype).itemsize, jnp.dtype(y.dtype).itemsize)
    gran = max(8, 32 // itemsize)          # sublane packing: 8 f32, 16 bf16, 32 int8

    rows_total = n // LANES
    total = jnp.float32(0.0)
    n_main = 0

    if rows_total >= gran:
        n_main = rows_total * LANES

        # Inner accumulation chunk (~128 KiB) and per-step DMA tile (~2 MiB per
        # input), both byte-targeted, dtype-granular and capped by what's there.
        chunk_rows = max(gran, _CHUNK_BYTES // (LANES * itemsize))
        chunk_rows = min(chunk_rows, (rows_total // gran) * gran)
        tile_rows = max(chunk_rows,
                        (_TARGET_BLOCK_BYTES // (LANES * itemsize))
                        // chunk_rows * chunk_rows)
        tile_rows = min(tile_rows,
                        max(chunk_rows, rows_total // chunk_rows * chunk_rows))

        num_tiles = pl.cdiv(rows_total, tile_rows)

        if num_cores is None:
            num_cores = _num_tensorcores()
        num_cores = max(1, min(int(num_cores), num_tiles))
        tiles_per_core = pl.cdiv(num_tiles, num_cores)

        # Any tile (boundary or per-core overflow) that isn't fully in-bounds?
        mask_needed = (num_cores * tiles_per_core * tile_rows) > rows_total

        if num_cores == 1:
            in_map = lambda c, i: (i, 0)
        else:
            last_block = num_tiles - 1
            # Clamp overflow tiles of the last core onto the last real block;
            # their logical rows are >= rows_total so the kernel masks them out.
            in_map = lambda c, i: (
                jnp.minimum(c * tiles_per_core + i, last_block), 0)

        # Free reshape when n % 128 == 0 (typical image tensors). Otherwise the
        # prefix slice materializes one HBM copy of the main region before the
        # kernel runs (~3x HBM traffic for that rare, non-lane-aligned case).
        x2 = xf[:n_main].reshape(rows_total, LANES)
        y2 = yf[:n_main].reshape(rows_total, LANES)

        kernel = functools.partial(
            _charbonnier_partial_kernel,
            eps=eps,
            rows_total=rows_total,
            tile_rows=tile_rows,
            chunk_rows=chunk_rows,
            tiles_per_core=tiles_per_core,
            mask_needed=mask_needed,
        )

        partials = pl.pallas_call(
            kernel,
            out_shape=jax.ShapeDtypeStruct((num_cores, 8, LANES), jnp.float32),
            grid_spec=pltpu.PrefetchScalarGridSpec(
                num_scalar_prefetch=0,
                grid=(num_cores, tiles_per_core),
                in_specs=[
                    pl.BlockSpec((tile_rows, LANES), in_map),
                    pl.BlockSpec((tile_rows, LANES), in_map),
                ],
                out_specs=pl.BlockSpec((1, 8, LANES), lambda c, i: (c, 0, 0)),
            ),
            compiler_params=pltpu.CompilerParams(
                dimension_semantics=("parallel", "arbitrary"),
            ),
        )(x2, y2)
        total = total + jnp.sum(partials)

    n_tail = n - n_main
    if n_tail:
        x_t = xf[n_main:].astype(jnp.float32)
        y_t = yf[n_main:].astype(jnp.float32)
        d_t = x_t - y_t
        total = total + jnp.sum(jnp.sqrt(d_t * d_t + jnp.float32(eps)))

    return total / jnp.float32(n)


def charbonnier_loss_ref(x, y, eps=1e-06):
    d = x.astype(jnp.float32) - y.astype(jnp.float32)
    return jnp.mean(jnp.sqrt(d * d + eps))


if __name__ == "__main__":
    key = jax.random.PRNGKey(0)
    kx, ky = jax.random.split(key)

    # Case 1: NCHW, size divisible by 128 -> single full tile, fast path only.
    x1 = jax.random.normal(kx, (2, 4, 16, 16), dtype=jnp.float32)
    y1 = jax.random.normal(ky, (2, 4, 16, 16), dtype=jnp.float32)
    loss1 = charbonnier_loss(x1, y1)
    jax.block_until_ready(loss1)
    assert jnp.allclose(loss1, charbonnier_loss_ref(x1, y1), rtol=1e-5, atol=1e-6)

    # Case 2: odd spatial size -> partial last tile (masked branch) + lane tail.
    x2 = jax.random.normal(kx, (2, 3, 20, 20), dtype=jnp.float32)
    y2 = jax.random.normal(ky, (2, 3, 20, 20), dtype=jnp.float32)
    loss2 = charbonnier_loss(x2, y2)
    jax.block_until_ready(loss2)
    assert jnp.allclose(loss2, charbonnier_loss_ref(x2, y2), rtol=1e-5, atol=1e-6)

    # Case 3: bf16 inputs streamed as bf16 ((16,128) packed min tile), upcast in-kernel.
    x3 = jax.random.normal(kx, (2, 4, 16, 16), dtype=jnp.bfloat16)
    y3 = jax.random.normal(ky, (2, 4, 16, 16), dtype=jnp.bfloat16)
    loss3 = charbonnier_loss(x3, y3)
    jax.block_until_ready(loss3)
    assert jnp.allclose(loss3, charbonnier_loss_ref(x3, y3), rtol=1e-3, atol=1e-3)

    # Case 4: 768 rows -> one tile, multiple inner chunks (fori_loop fast path).
    x4 = jax.random.normal(kx, (4, 8, 32, 96), dtype=jnp.float32)
    y4 = jax.random.normal(ky, (4, 8, 32, 96), dtype=jnp.float32)
    loss4 = charbonnier_loss(x4, y4)
    jax.block_until_ready(loss4)
    assert jnp.allclose(loss4, charbonnier_loss_ref(x4, y4), rtol=1e-5, atol=1e-6)

    # Case 5: multiple tiles + multiple chunks + masked boundary tile.
    x5 = jax.random.normal(kx, (2, 4, 96, 100), dtype=jnp.float32)
    y5 = jax.random.normal(ky, (2, 4, 96, 100), dtype=jnp.float32)
    loss5 = charbonnier_loss(x5, y5)
    jax.block_until_ready(loss5)
    assert jnp.allclose(loss5, charbonnier_loss_ref(x5, y5), rtol=1e-5, atol=1e-6)

    print("KERNEL_OK")
</pallas_src>

<mosaic_0001>
module attributes {stable_mosaic.version = 11 : i64} {
  func.func @_charbonnier_partial_kernel(%arg0: i32, %arg1: i32, %arg2: memref<16x128xf32, #tpu.memory_space<vmem>>, %arg3: memref<16x128xf32, #tpu.memory_space<vmem>>, %arg4: memref<1x8x128xf32, #tpu.memory_space<vmem>>) attributes {dimension_semantics = [#tpu.dimension_semantics<parallel>, #tpu.dimension_semantics<arbitrary>], iteration_bounds = array<i64: 1, 1>, scalar_prefetch = 0 : i64, scratch_operands = 0 : i64, tpu.core_type = #tpu.core_type<tc>, window_params = [{transform_indices = @transform_0, window_bounds = array<i64: 16, 128>}, {transform_indices = @transform_1, window_bounds = array<i64: 16, 128>}, {transform_indices = @transform_2, window_bounds = array<i64: 1, 8, 128>}]} {
    %c0_i32 = arith.constant 0 : i32
    %0 = arith.cmpi eq, %arg1, %c0_i32 : i32
    %1 = arith.extui %0 : i1 to i32
    %c0_i32_0 = arith.constant 0 : i32
    %2 = arith.cmpi ne, %1, %c0_i32_0 : i32
    scf.if %2 {
      %cst_11 = arith.constant 0.000000e+00 : f32
      %16 = vector.broadcast %cst_11 : f32 to vector<1x8x128xf32>
      %c0_12 = arith.constant 0 : index
      %c0_13 = arith.constant 0 : index
      %c0_14 = arith.constant 0 : index
      %17 = vector.load %arg4[%c0_12, %c0_13, %c0_14] : memref<1x8x128xf32, #tpu.memory_space<vmem>>, vector<1x8x128xf32>
      tpu.vector_store %arg4[%c0_12, %c0_13, %c0_14], %16 {strides = array<i32>} : memref<1x8x128xf32, #tpu.memory_space<vmem>>, vector<1x8x128xf32>,
    } else {
    }
    %c0 = arith.constant 0 : index
    %c0_1 = arith.constant 0 : index
    %3 = vector.load %arg2[%c0, %c0_1] : memref<16x128xf32, #tpu.memory_space<vmem>>, vector<16x128xf32>
    %c0_2 = arith.constant 0 : index
    %c0_3 = arith.constant 0 : index
    %4 = vector.load %arg3[%c0_2, %c0_3] : memref<16x128xf32, #tpu.memory_space<vmem>>, vector<16x128xf32>
    %5 = arith.subf %3, %4 : vector<16x128xf32>
    %6 = arith.mulf %5, %5 : vector<16x128xf32>
    %cst = arith.constant 9.99999997E-7 : f32
    %7 = vector.broadcast %cst : f32 to vector<16x128xf32>
    %8 = arith.addf %6, %7 : vector<16x128xf32>
    %9 = math.sqrt %8 : vector<16x128xf32>
    %10 = vector.shape_cast %9 : vector<16x128xf32> to vector<2x8x128xf32>
    %cst_4 = arith.constant dense<0.000000e+00> : vector<8x128xf32>
    %11 = vector.multi_reduction <add>, %10, %cst_4 [0] : vector<2x8x128xf32> to vector<8x128xf32>
    %c0_5 = arith.constant 0 : index
    %c0_6 = arith.constant 0 : index
    %c0_7 = arith.constant 0 : index
    %12 = vector.load %arg4[%c0_5, %c0_6, %c0_7] : memref<1x8x128xf32, #tpu.memory_space<vmem>>, vector<1x8x128xf32>
    %13 = vector.shape_cast %11 : vector<8x128xf32> to vector<1x8x128xf32>
    %14 = arith.addf %12, %13 : vector<1x8x128xf32>
    %c0_8 = arith.constant 0 : index
    %c0_9 = arith.constant 0 : index
    %c0_10 = arith.constant 0 : index
    %15 = vector.load %arg4[%c0_8, %c0_9, %c0_10] : memref<1x8x128xf32, #tpu.memory_space<vmem>>, vector<1x8x128xf32>
    tpu.vector_store %arg4[%c0_8, %c0_9, %c0_10], %14 {strides = array<i32>} : memref<1x8x128xf32, #tpu.memory_space<vmem>>, vector<1x8x128xf32>,
    return
  }
  func.func @transform_0(%arg0: i32, %arg1: i32) -> (i32, i32) {
    %c0_i32 = arith.constant 0 : i32
    %c0_i32_0 = arith.constant 0 : i32
    return %arg1, %c0_i32 : i32, i32
  }
  func.func @transform_1(%arg0: i32, %arg1: i32) -> (i32, i32) {
    %c0_i32 = arith.constant 0 : i32
    %c0_i32_0 = arith.constant 0 : i32
    return %arg1, %c0_i32 : i32, i32
  }
  func.func @transform_2(%arg0: i32, %arg1: i32) -> (i32, i32, i32) {
    %c0_i32 = arith.constant 0 : i32
    %c0_i32_0 = arith.constant 0 : i32
    %c0_i32_1 = arith.constant 0 : i32
    return %arg0, %c0_i32, %c0_i32_0 : i32, i32, i32
  }
}

</mosaic_0001>

<bundles_post_ra>
// kernel: tpu_custom_call.1
= control target key start
LH: loop header
LB: loop body
LE: loop exit
PB: predicated region body
PF: predicated region fallthrough
CT: control target
= control target key end

     0   :  { %7 = vsyncpa [#allocation3], 0  ;;  %s227_s0 = inlined_call_operand.hbm [shape: f32[16,128], index: 0, kind: input, shape index: {}]   ;;  %s228_s1 = inlined_call_operand.hbm [shape: f32[16,128], index: 1, kind: input, shape index: {}]   ;;  %s229_s2 = inlined_call_operand.hbm [shape: f32[1,8,128], index: 2, kind: output, shape index: {}]  }
   0x1   :  { %8 = vsyncpa [#allocation6], 0 }
   0x2   :  { %9 = vsyncpa [#allocation4], 0  ;;  %s171_s9 = smov [#allocation2]   ;;  %s99_s13 = scalar_lea.hbm %s227_s0, 256 }
   0x3   :  { %s15_s10 = sshll.u32 %s171_s9, 4  ;;  %p100_p0 = scmp.ne.s32.totalorder %s227_s0, %s99_s13  ;;  %s16_s10 = int_to_ptr.vmem [resolvable:$true] %s15_s10 }
   0x4   :  { %p103_p1 = scmp.lt.u32.totalorder %s99_s13, %s227_s0 }
   0x6   :  { %p105_p2 = pnand %p103_p1, %p100_p0 }
   0x8   :  { %108 = shalt.err (!%p105_p2)
}
   0x9   :  { %s109_s18 = scalar_lea.vmem %s16_s10, 256  ;;  %p114_p4 = scmp.lt.s32.totalorder %s16_s10, %s16_s10 }
   0xa   :  { %p110_p3 = scmp.ne.s32.totalorder %s16_s10, %s109_s18  ;;  %p115_p5 = scmp.lt.s32.totalorder %s109_s18, %s109_s18 }
   0xc   :  { %p116_p6 = por %p115_p5, %p114_p4 }
   0xe   :  { %p117_p7 = pnand %p116_p6, %p110_p3 }
  0x10   :  { %120 = shalt.err (!%p117_p7)
}
  0x11   :  { %s172_s19 = smov 128   ;;  %s173_s20 = smov 8  }
  0x12   :  { %21 = dma.hbm_to_vmem [thread:$0]  %s227_s0, 256, %s16_s10, [#allocation3], %s172_s19, %s172_s19, %s173_s20  }
  0x13   :  { %s174_s23 = smov [#allocation5]   ;;  %s121_s27 = scalar_lea.hbm %s228_s1, 256 }
  0x14   :  { %s27_s24 = sshll.u32 %s174_s23, 4  ;;  %p122_p8 = scmp.ne.s32.totalorder %s228_s1, %s121_s27  ;;  %s28_s24 = int_to_ptr.vmem [resolvable:$true] %s27_s24 }
  0x15   :  { %p125_p9 = scmp.lt.u32.totalorder %s121_s27, %s228_s1 }
  0x17   :  { %p127_p10 = pnand %p125_p9, %p122_p8 }
  0x19   :  { %130 = shalt.err (!%p127_p10)
}
  0x1a   :  { %s131_s4 = scalar_lea.vmem %s28_s24, 256  ;;  %p136_p12 = scmp.lt.s32.totalorder %s28_s24, %s28_s24 }
  0x1b   :  { %p132_p11 = scmp.ne.s32.totalorder %s28_s24, %s131_s4  ;;  %p137_p13 = scmp.lt.s32.totalorder %s131_s4, %s131_s4 }
  0x1d   :  { %p138_p0 = por %p137_p13, %p136_p12 }
  0x1f   :  { %p139_p1 = pnand %p138_p0, %p132_p11 }
  0x21   :  { %142 = shalt.err (!%p139_p1)
}
  0x22   :  { %33 = dma.hbm_to_vmem [thread:$0]  %s228_s1, 256, %s28_s24, [#allocation6], %s172_s19, %s172_s19, %s173_s20  }
  0x23   :  { %165 = dma.done.wait [#allocation3], 256  }
  0x24   :  { %166 = vsyncadd [#allocation3], 4294967040 }
  0x25   :  { %167 = dma.done.wait [#allocation6], 256  }
  0x26   :  { %168 = vsyncadd [#allocation6], 4294967040  ;;  %v45_v0 = vld [vmem:[#allocation2] sm:$0xff]  ;;  %v46_v1 = vld [vmem:[#allocation2 + $0x8] sm:$0xff]  ;;  %s175_s1 = smov [#allocation7]  }
  0x27   :  { %v47_v2 = vld [vmem:[#allocation5] sm:$0xff]  ;;  %v48_v3 = vld [vmem:[#allocation5 + $0x8] sm:$0xff]  ;;  %s79_s6 = sshll.u32 %s175_s1, 4  ;;  %s80_s6 = int_to_ptr.vmem [resolvable:$true] %s79_s6 }
  0x28   :  { %v49_v4 = vsub.f32 %v45_v0, %v47_v2  ;;  %v50_v5 = vsub.f32 %v46_v1, %v48_v3  ;;  %s143_s7 = scalar_lea.vmem %s80_s6, 128  ;;  %p148_p3 = scmp.lt.s32.totalorder %s80_s6, %s80_s6 }
  0x29   :  { %p144_p2 = scmp.ne.s32.totalorder %s80_s6, %s143_s7  ;;  %p149_p4 = scmp.lt.s32.totalorder %s143_s7, %s143_s7 }
  0x2a   :  { %v51_v6 = vmul.f32 %v49_v4, %v49_v4  ;;  %v52_v7 = vmul.f32 %v50_v5, %v50_v5 }
  0x2b   :  { %p150_p5 = por %p149_p4, %p148_p3 }
  0x2c   :  { %v53_v8 = vadd.f32 1e-06, %v51_v6  ;;  %v54_v9 = vadd.f32 1e-06, %v52_v7 }
  0x2d   :  { %p151_p6 = pnand %p150_p5, %p144_p2 }
  0x2e   :  { %95 = vrsqrt.f32 %v53_v8  ;;  %vm57_vm0 = vcmp.eq.f32.partialorder %v53_v8, inf  ;;  %v60_v11 = vand.u32 2147483648, %v53_v8  ;;  %vm59_vm1 = vcmp.eq.f32.partialorder %v53_v8, 0.0 }
  0x2f   :  { %97 = vrsqrt.f32 %v54_v9  ;;  %vm64_vm2 = vcmp.eq.f32.partialorder %v54_v9, inf  ;;  %v67_v14 = vand.u32 2147483648, %v54_v9  ;;  %vm66_vm3 = vcmp.eq.f32.partialorder %v54_v9, 0.0 }
  0x38   :  { %v96_v10 = vpop.eup %95 }
  0x39   :  { %v98_v12 = vpop.eup %97  ;;  %v56_v13 = vmul.f32 %v96_v10, %v53_v8 }
  0x3a   :  { %v63_v15 = vmul.f32 %v98_v12, %v54_v9 }
  0x3b   :  { %v58_v16 = vsel %vm57_vm0, %v53_v8, %v56_v13 }
  0x3c   :  { %v61_v17 = vsel %vm59_vm1, %v60_v11, %v58_v16  ;;  %v65_v18 = vsel %vm64_vm2, %v54_v9, %v63_v15 }
  0x3d   :  { %v68_v19 = vsel %vm66_vm3, %v67_v14, %v65_v18 }
  0x3e   :  { %v69_v20 = vadd.f32 %v68_v19, %v61_v17 }
  0x40   :  { %72 = vst [vmem:[#allocation7] sm:$0xff] %v69_v20 }
  0x41   :  { %154 = shalt.err (!%p151_p6)
}
  0x42   :  { %s155_s10 = scalar_lea.hbm %s229_s2, 128 }
  0x43   :  { %p156_p7 = scmp.ne.s32.totalorder %s229_s2, %s155_s10  ;;  %p159_p8 = scmp.lt.u32.totalorder %s155_s10, %s229_s2 }
  0x45   :  { %p161_p9 = pnand %p159_p8, %p156_p7 }
  0x47   :  { %164 = shalt.err (!%p161_p9)
}
  0x48   :  { %82 = dma.vmem_to_hbm [thread:$0]  %s80_s6, 128, %s229_s2, [#allocation4]  }
  0x49   :  { %169 = dma.done.wait [#allocation4], 128  }
  0x4a   :  { %170 = vsyncadd [#allocation4], 4294967168 }
  0x4b   :  { %86 = vsyncpa [#allocation3], 1 }
  0x4c   :  { %87 = vsyncpa [#allocation6], 1 }
  0x4d   :  { %88 = vsyncpa [#allocation4], 1 }

</bundles_post_ra>
